<compile_context>
chip_gen: v6e
topology: v6e:2x2x1
jax: 0.10.0
libtpu: 0.0.40
codegen_flags: <defaults>
</compile_context>

<pallas_src>
import jax
import jax.numpy as jnp
from jax.experimental import pallas as pl
from jax.experimental.pallas import tpu as pltpu


def _round_up(x, m):
    return (x + m - 1) // m * m


def encoder_attention_kernel(x_ref, h_ref, wt_ref, b_ref, o_ref):
    # Linear on the MXU: (TB, lstm_out) @ (lstm_out, in_size) + bias, f32 acc.
    context = jnp.dot(
        h_ref[...],
        wt_ref[...],
        preferred_element_type=jnp.float32,
        precision=jax.lax.Precision.HIGHEST,
    ) + b_ref[...]

    # Numerically-stable, exact softmax along the feature axis.
    m = jnp.max(context, axis=-1, keepdims=True)
    e = jnp.exp(context - m)
    denom = jnp.sum(e, axis=-1, keepdims=True)
    scores = e / denom

    # Elementwise gating of x by the attention scores (f32 math, cast at store).
    o_ref[...] = (scores * x_ref[...].astype(jnp.float32)).astype(o_ref.dtype)


def prepare_params(weight, bias):
    """One-time parameter prep (NOT on the hot path; constant-folds under jit).

    weight: (in_size, lstm_out)  -- PyTorch nn.Linear layout
    bias  : (in_size,)
    Returns:
      wt : (lstm_out, in_size) f32  (pre-transposed for the in-kernel matmul)
      b2d: (1, in_size) f32
    """
    wt = jnp.asarray(weight, jnp.float32).T
    b2d = jnp.asarray(bias, jnp.float32).reshape(1, -1)
    return wt, b2d


def encoder_attention(x, hidden_states, wt, b2d, *, block_b=None):
    """x: (B, in_size), hidden_states: (B, lstm_out),
    wt: (lstm_out, in_size) pre-transposed, b2d: (1, in_size)."""
    B, in_size = x.shape
    Bh, lstm_out = hidden_states.shape
    assert Bh == B
    assert wt.shape == (lstm_out, in_size)
    assert b2d.shape == (1, in_size)

    x_bytes = jnp.dtype(x.dtype).itemsize
    h_bytes = jnp.dtype(hidden_states.dtype).itemsize

    if block_b is None:
        # Let the VMEM budget drive the tile (no artificial small cap).
        budget = 20 * 1024 * 1024                      # double-buffered tile bytes
        resident = (wt.size + b2d.size) * 4
        per_row = 2 * (2 * in_size * x_bytes + lstm_out * h_bytes)  # x+out+h, 2 bufs
        block_b = max(8, ((budget - resident) // per_row) // 8 * 8)
        block_b = min(block_b, 8192)
        # Keep >= 4 grid steps on big batches so v7x's two TensorCores share work.
        if B >= 4 * 1024:
            block_b = min(block_b, _round_up(pl.cdiv(B, 4), 8))

    if block_b >= B:
        block_b = B          # single block; "equal full dim" satisfies (8,) rule
    else:
        block_b = max(8, (block_b // 8) * 8)
    grid = (pl.cdiv(B, block_b),)   # ragged last block (if any) is masked by Pallas

    cost = pl.CostEstimate(
        flops=2 * B * lstm_out * in_size,
        transcendentals=B * in_size,
        bytes_accessed=(2 * B * in_size * x_bytes          # x read + out write
                        + B * lstm_out * h_bytes           # hidden read
                        + (wt.size + b2d.size) * 4),       # resident params
    )

    return pl.pallas_call(
        encoder_attention_kernel,
        out_shape=jax.ShapeDtypeStruct((B, in_size), x.dtype),
        grid=grid,
        in_specs=[
            pl.BlockSpec((block_b, in_size), lambda i: (i, 0)),    # x tile
            pl.BlockSpec((block_b, lstm_out), lambda i: (i, 0)),   # hidden tile
            pl.BlockSpec((lstm_out, in_size), lambda i: (0, 0)),   # W^T (resident)
            pl.BlockSpec((1, in_size), lambda i: (0, 0)),          # bias (resident)
        ],
        out_specs=pl.BlockSpec((block_b, in_size), lambda i: (i, 0)),
        compiler_params=pltpu.CompilerParams(
            dimension_semantics=("parallel",),
            vmem_limit_bytes=32 * 1024 * 1024,   # big tiles compile on v5e too
        ),
        cost_estimate=cost,
    )(x, hidden_states, wt, b2d)


if __name__ == "__main__":
    # Small shapes consistent with the module: batch=8, in_size=64, lstm_out=32.
    B, in_size, lstm_out = 8, 64, 32

    key = jax.random.PRNGKey(0)
    kx, kh, kw, kb = jax.random.split(key, 4)

    x = jax.random.normal(kx, (B, in_size), dtype=jnp.float32)
    hidden_states = jax.random.normal(kh, (B, lstm_out), dtype=jnp.float32)

    # Deterministic parameter init (nn.Linear-style uniform bound).
    bound = 1.0 / (lstm_out ** 0.5)
    weight = jax.random.uniform(
        kw, (in_size, lstm_out), minval=-bound, maxval=bound, dtype=jnp.float32
    )
    bias = jax.random.uniform(
        kb, (in_size,), minval=-bound, maxval=bound, dtype=jnp.float32
    )

    # One-time parameter prep (pre-transpose W, reshape bias).
    wt, b2d = prepare_params(weight, bias)

    out = encoder_attention(x, hidden_states, wt, b2d)
    out = jax.block_until_ready(out)

    # Pure-JAX reference check.
    ref_context = jnp.dot(
        hidden_states, weight.T, precision=jax.lax.Precision.HIGHEST
    ) + bias
    ref = jax.nn.softmax(ref_context, axis=-1) * x
    assert jnp.allclose(out, ref, atol=1e-4, rtol=1e-4), "mismatch vs reference"

    print("KERNEL_OK")
</pallas_src>

<mosaic_0001>
module attributes {stable_mosaic.version = 11 : i64} {
  func.func @encoder_attention_kernel(%arg0: i32, %arg1: memref<8x64xf32, #tpu.memory_space<vmem>>, %arg2: memref<8x32xf32, #tpu.memory_space<vmem>>, %arg3: memref<32x64xf32, #tpu.memory_space<vmem>>, %arg4: memref<1x64xf32, #tpu.memory_space<vmem>>, %arg5: memref<8x64xf32, #tpu.memory_space<vmem>>) attributes {dimension_semantics = [#tpu.dimension_semantics<parallel>], iteration_bounds = array<i64: 1>, scalar_prefetch = 0 : i64, scratch_operands = 0 : i64, tpu.core_type = #tpu.core_type<tc>, window_params = [{transform_indices = @transform_0, window_bounds = array<i64: 8, 64>}, {transform_indices = @transform_1, window_bounds = array<i64: 8, 32>}, {pipeline_mode = #tpu.pipeline_mode<synchronous>, transform_indices = @transform_2, window_bounds = array<i64: 32, 64>}, {pipeline_mode = #tpu.pipeline_mode<synchronous>, transform_indices = @transform_3, window_bounds = array<i64: 1, 64>}, {transform_indices = @transform_4, window_bounds = array<i64: 8, 64>}]} {
    %c0 = arith.constant 0 : index
    %c0_0 = arith.constant 0 : index
    %0 = vector.load %arg2[%c0, %c0_0] : memref<8x32xf32, #tpu.memory_space<vmem>>, vector<8x32xf32>
    %c0_1 = arith.constant 0 : index
    %c0_2 = arith.constant 0 : index
    %1 = vector.load %arg3[%c0_1, %c0_2] : memref<32x64xf32, #tpu.memory_space<vmem>>, vector<32x64xf32>
    %cst = arith.constant dense<0.000000e+00> : vector<8x64xf32>
    %2 = tpu.matmul %0, %1, %cst {dimension_numbers = #tpu.dot_dimension_numbers<[1], [0], [0], [1], [0, 0, 1, 1], [], []>, precision = #tpu.contract_precision<fp32>} : vector<8x32xf32>, vector<32x64xf32>, vector<8x64xf32> -> vector<8x64xf32>
    %c0_3 = arith.constant 0 : index
    %c0_4 = arith.constant 0 : index
    %3 = vector.load %arg4[%c0_3, %c0_4] : memref<1x64xf32, #tpu.memory_space<vmem>>, vector<1x64xf32>
    %4 = vector.broadcast %3 : vector<1x64xf32> to vector<8x64xf32>
    %5 = arith.addf %2, %4 : vector<8x64xf32>
    %cst_5 = arith.constant dense<0xFF800000> : vector<8xf32>
    %6 = vector.multi_reduction <maximumf>, %5, %cst_5 [1] : vector<8x64xf32> to vector<8xf32>
    %7 = vector.shape_cast %6 : vector<8xf32> to vector<8x1xf32>
    %8 = vector.broadcast %7 : vector<8x1xf32> to vector<8x64xf32>
    %9 = arith.subf %5, %8 : vector<8x64xf32>
    %10 = math.exp %9 : vector<8x64xf32>
    %cst_6 = arith.constant dense<0.000000e+00> : vector<8xf32>
    %11 = vector.multi_reduction <add>, %10, %cst_6 [1] : vector<8x64xf32> to vector<8xf32>
    %12 = vector.shape_cast %11 : vector<8xf32> to vector<8x1xf32>
    %13 = vector.broadcast %12 : vector<8x1xf32> to vector<8x64xf32>
    %14 = arith.divf %10, %13 : vector<8x64xf32>
    %c0_7 = arith.constant 0 : index
    %c0_8 = arith.constant 0 : index
    %15 = vector.load %arg1[%c0_7, %c0_8] : memref<8x64xf32, #tpu.memory_space<vmem>>, vector<8x64xf32>
    %16 = arith.mulf %14, %15 : vector<8x64xf32>
    %c0_9 = arith.constant 0 : index
    %c0_10 = arith.constant 0 : index
    %17 = vector.load %arg5[%c0_9, %c0_10] : memref<8x64xf32, #tpu.memory_space<vmem>>, vector<8x64xf32>
    tpu.vector_store %arg5[%c0_9, %c0_10], %16 {strides = array<i32>} : memref<8x64xf32, #tpu.memory_space<vmem>>, vector<8x64xf32>,
    return
  }
  func.func @transform_0(%arg0: i32) -> (i32, i32) {
    %c0_i32 = arith.constant 0 : i32
    %c0_i32_0 = arith.constant 0 : i32
    return %arg0, %c0_i32 : i32, i32
  }
  func.func @transform_1(%arg0: i32) -> (i32, i32) {
    %c0_i32 = arith.constant 0 : i32
    %c0_i32_0 = arith.constant 0 : i32
    return %arg0, %c0_i32 : i32, i32
  }
  func.func @transform_2(%arg0: i32) -> (i32, i32) {
    %c0_i32 = arith.constant 0 : i32
    %c0_i32_0 = arith.constant 0 : i32
    %c0_i32_1 = arith.constant 0 : i32
    return %c0_i32, %c0_i32_0 : i32, i32
  }
  func.func @transform_3(%arg0: i32) -> (i32, i32) {
    %c0_i32 = arith.constant 0 : i32
    %c0_i32_0 = arith.constant 0 : i32
    %c0_i32_1 = arith.constant 0 : i32
    return %c0_i32, %c0_i32_0 : i32, i32
  }
  func.func @transform_4(%arg0: i32) -> (i32, i32) {
    %c0_i32 = arith.constant 0 : i32
    %c0_i32_0 = arith.constant 0 : i32
    return %arg0, %c0_i32 : i32, i32
  }
}

</mosaic_0001>

<bundles_post_ra>
// kernel: tpu_custom_call.1
= control target key start
LH: loop header
LB: loop body
LE: loop exit
PB: predicated region body
PF: predicated region fallthrough
CT: control target
= control target key end

     0   :  { %9 = vsyncpa [#allocation3], 0  ;;  %s899_s0 = inlined_call_operand.hbm [shape: f32[8,64], index: 0, kind: input, shape index: {}]   ;;  %s900_s1 = inlined_call_operand.hbm [shape: f32[8,32], index: 1, kind: input, shape index: {}]   ;;  %s901_s2 = inlined_call_operand.hbm [shape: f32[32,64], index: 2, kind: input, shape index: {}]   ;;  %s902_s3 = inlined_call_operand.vmem [shape: f32[1,64], index: 3, kind: input, shape index: {}]   ;;  %s903_s4 = inlined_call_operand.hbm [shape: f32[8,64], index: 4, kind: output, shape index: {}]  }
   0x1   :  { %10 = vsyncpa [#allocation6], 0 }
   0x2   :  { %11 = vsyncpa [#allocation4], 0  ;;  %s782_s15 = smov [#allocation5]   ;;  %s783_s17 = smov [#allocation2]  }
   0x3   :  { %s28_s16 = sshll.u32 %s782_s15, 4  ;;  %s18_s18 = sshll.u32 %s783_s17, 4  ;;  %s29_s16 = int_to_ptr.vmem [resolvable:$true] %s28_s16  ;;  %s19_s18 = int_to_ptr.vmem [resolvable:$true] %s18_s18 }
   0x4   :  { %s704_s19 = scalar_lea.vmem %s29_s16, 128  ;;  %p709_p1 = scmp.lt.s32.totalorder %s29_s16, %s29_s16 }
   0x5   :  { %p705_p0 = scmp.ne.s32.totalorder %s29_s16, %s704_s19  ;;  %p710_p2 = scmp.lt.s32.totalorder %s704_s19, %s704_s19 }
   0x7   :  { %p711_p3 = por %p710_p2, %p709_p1 }
   0x9   :  { %p712_p4 = pnand %p711_p3, %p705_p0 }
   0xb   :  { %715 = shalt.err (!%p712_p4)
}
   0xc   :  { %31 = dma.hbm_to_vmem [thread:$0]  %s900_s1, 128, %s29_s16, [#allocation6]  }
   0xd   :  { %s724_s22 = scalar_lea.vmem %s19_s18, 128  ;;  %p729_p6 = scmp.lt.s32.totalorder %s19_s18, %s19_s18 }
   0xe   :  { %p725_p5 = scmp.ne.s32.totalorder %s19_s18, %s724_s22  ;;  %p730_p7 = scmp.lt.s32.totalorder %s724_s22, %s724_s22 }
  0x10   :  { %p731_p8 = por %p730_p7, %p729_p6 }
  0x12   :  { %p732_p9 = pnand %p731_p8, %p725_p5 }
  0x14   :  { %735 = shalt.err (!%p732_p9)
}
  0x15   :  { %21 = dma.hbm_to_vmem [thread:$0]  %s899_s0, 128, %s19_s18, [#allocation3]  }
  0x16   :  { %s784_s25 = smov [#allocation7]  }
  0x17   :  { %s37_s26 = sshll.u32 %s784_s25, 4  ;;  %s38_s26 = int_to_ptr.vmem [resolvable:$true] %s37_s26 }
  0x18   :  { %s744_s27 = scalar_lea.vmem %s38_s26, 512  ;;  %p749_p11 = scmp.lt.s32.totalorder %s38_s26, %s38_s26 }
  0x19   :  { %p745_p10 = scmp.ne.s32.totalorder %s38_s26, %s744_s27  ;;  %p750_p12 = scmp.lt.s32.totalorder %s744_s27, %s744_s27 }
  0x1b   :  { %p751_p13 = por %p750_p12, %p749_p11 }
  0x1d   :  { %p752_p0 = pnand %p751_p13, %p745_p10 }
  0x1f   :  { %755 = shalt.err (!%p752_p0)
}
  0x20   :  { %s785_s1 = smov 128   ;;  %s786_s28 = smov 8  }
  0x21   :  { %43 = dma.hbm_to_vmem [thread:$0]  %s901_s2, 512, %s38_s26, [#allocation6], %s785_s1, %s785_s1, %s786_s28  }
  0x22   :  { %776 = dma.done.wait [#allocation3], 128  }
  0x23   :  { %777 = vsyncadd [#allocation3], 4294967168 }
  0x24   :  { %778 = dma.done.wait [#allocation6], 640  }
  0x25   :  { %779 = vsyncadd [#allocation6], 4294966656  ;;  %v787_v0 = vmov 0.0   ;;  %vm788_vm0 = vmmov 0   ;;  %vm67_vm1 = vcmask 261120   ;;  %v59_v1 = vld [vmem:[#allocation7 + $0x18] sm:$0xff] }
  0x26   :  { %618 = vmatprep.subr.mxu0 %v787_v0  ;;  %629 = vmatprep.subr.mxu1 %v787_v0  ;;  %v58_v2 = vld [vmem:[#allocation7 + $0x10] sm:$0xff]  ;;  %v57_v3 = vld [vmem:[#allocation7 + $0x8] sm:$0xff]  ;;  %v830_v4 = vand.u32 4294901760, %v59_v1  ;;  %v56_v7 = vld [vmem:[#allocation7] sm:$0xff]  ;;  %vm556_vm2 = vcmask 523264  }
  0x27   :  { %626 = vmatprep.mubr.msk.f32.mxu0 %vm788_vm0, %v787_v0  ;;  %637 = vmatprep.mubr.msk.f32.mxu1 %vm788_vm0, %v787_v0  ;;  %v832_v5 = vand.u32 4294901760, %v58_v2  ;;  %v834_v6 = vand.u32 4294901760, %v57_v3  ;;  %v55_v8 = vld [vmem:[#allocation5] sm:$0xff]  ;;  %v836_v9 = vand.u32 4294901760, %v56_v7  ;;  %v587_v35 = vld [vmem:[%s902_s3] ss:$0 sm:$0xff] }
  0x28   :  { %v69_v10 = vsel %vm67_vm1, %v55_v8, 0  ;;  %619 = vmatpush3.msra.mxu0 %v830_v4  ;;  %v176_v11 = vsub.f32 %v59_v1, %v830_v4  ;;  %v568_v59 = vld [vmem:[#allocation2] sm:$0xff]  ;;  %s789_s3 = smov [#allocation8]  }
  0x29   :  { %v840_v12 = vand.u32 4294901760, %v69_v10  ;;  %v183_v13 = vsub.f32 %v58_v2, %v832_v5  ;;  %v190_v14 = vsub.f32 %v57_v3, %v834_v6  ;;  %620 = vmatprep.subr.mxu0 %v787_v0  ;;  %v197_v15 = vsub.f32 %v56_v7, %v836_v9  ;;  %s577_s5 = sshll.u32 %s789_s3, 4  ;;  %s578_s5 = int_to_ptr.vmem [resolvable:$true] %s577_s5 }
  0x2a   :  { %621 = vmatpush3.msra.mxu0 %v832_v5  ;;  %v177_v16 = vand.u32 4294901760, %v176_v11  ;;  %s756_s6 = scalar_lea.vmem %s578_s5, 128  ;;  %p761_p2 = scmp.lt.s32.totalorder %s578_s5, %s578_s5 }
  0x2b   :  { %v141_v17 = vsub.f32 %v69_v10, %v840_v12  ;;  %v184_v18 = vand.u32 4294901760, %v183_v13  ;;  %v191_v19 = vand.u32 4294901760, %v190_v14  ;;  %622 = vmatprep.subr.mxu0 %v787_v0  ;;  %v198_v20 = vand.u32 4294901760, %v197_v15  ;;  %p757_p1 = scmp.ne.s32.totalorder %s578_s5, %s756_s6  ;;  %p762_p3 = scmp.lt.s32.totalorder %s756_s6, %s756_s6 }
  0x2c   :  { %623 = vmatpush3.msra.mxu0 %v834_v6  ;;  %v178_v21 = vsub.f32 %v176_v11, %v177_v16 }
  0x2d   :  { %v142_v22 = vand.u32 4294901760, %v141_v17  ;;  %v185_v23 = vsub.f32 %v183_v13, %v184_v18  ;;  %v192_v24 = vsub.f32 %v190_v14, %v191_v19  ;;  %624 = vmatprep.subr.mxu0 %v787_v0  ;;  %v199_v28 = vsub.f32 %v197_v15, %v198_v20  ;;  %p763_p4 = por %p762_p3, %p761_p2 }
  0x2e   :  { %625 = vmatpush3.msra.mxu0 %v836_v9  ;;  %v179_v25 = vand.u32 4294901760, %v178_v21 }
  0x2f   :  { %v143_v26 = vsub.f32 %v141_v17, %v142_v22  ;;  %v186_v27 = vand.u32 4294901760, %v185_v23  ;;  %640 = vmatprep.subr.mxu0 %v787_v0  ;;  %v193_v30 = vand.u32 4294901760, %v192_v24  ;;  %v200_v31 = vand.u32 4294901760, %v199_v28  ;;  %p764_p5 = pnand %p763_p4, %p757_p1 }
  0x30   :  { %630 = vmatpush3.msra.mxu1 %v179_v25 }
  0x31   :  { %v144_v29 = vand.u32 4294901760, %v143_v26  ;;  %631 = vmatprep.subr.mxu1 %v787_v0 }
  0x32   :  { %632 = vmatpush3.msra.mxu1 %v186_v27 }
  0x33   :  { %627 = vmatmul.mubr.f32.vlgmr.msra.gmra.mxu0 %v144_v29  ;;  %633 = vmatprep.subr.mxu1 %v787_v0 }
  0x34   :  { %641 = vmatpush3.msra.mxu0 %v176_v11  ;;  %634 = vmatpush3.msra.mxu1 %v193_v30 }
  0x35   :  { %642 = vmatprep.subr.mxu0 %v787_v0  ;;  %635 = vmatprep.subr.mxu1 %v787_v0 }
  0x36   :  { %643 = vmatpush3.msra.mxu0 %v183_v13  ;;  %636 = vmatpush3.msra.mxu1 %v200_v31 }
  0x37   :  { %644 = vmatprep.subr.mxu0 %v787_v0  ;;  %638 = vmatmul.mubr.f32.vlgmr.msra.gmra.mxu1 %v840_v12 }
  0x38   :  { %645 = vmatpush3.msra.mxu0 %v190_v14  ;;  %651 = vmatprep.subr.mxu1 %v787_v0 }
  0x39   :  { %646 = vmatprep.subr.mxu0 %v787_v0  ;;  %652 = vmatpush3.msra.mxu1 %v830_v4 }
  0x3a   :  { %647 = vmatpush3.msra.mxu0 %v197_v15  ;;  %648 = vmatprep.mubr.msk.f32.mxu0 %vm788_vm0, %v787_v0 }
  0x3b   :  { %653 = vmatprep.subr.mxu1 %v787_v0  ;;  %662 = vmatprep.subr.mxu0 %v787_v0 }
  0x3c   :  { %649 = vmatmul.mubr.f32.vlgmr.msra.gmra.mxu0 %v141_v17  ;;  %654 = vmatpush3.msra.mxu1 %v832_v5 }
  0x3d   :  { %663 = vmatpush3.msra.mxu0 %v177_v16  ;;  %655 = vmatprep.subr.mxu1 %v787_v0 }
  0x3e   :  { %664 = vmatprep.subr.mxu0 %v787_v0  ;;  %656 = vmatpush3.msra.mxu1 %v834_v6 }
  0x3f   :  { %665 = vmatpush3.msra.mxu0 %v184_v18  ;;  %657 = vmatprep.subr.mxu1 %v787_v0 }
  0x40   :  { %666 = vmatprep.subr.mxu0 %v787_v0  ;;  %658 = vmatpush3.msra.mxu1 %v836_v9 }
  0x41   :  { %659 = vmatprep.mubr.msk.f32.mxu1 %vm788_vm0, %v787_v0  ;;  %667 = vmatpush3.msra.mxu0 %v191_v19 }
  0x42   :  { %660 = vmatmul.mubr.f32.vlgmr.msra.gmra.mxu1 %v142_v22  ;;  %668 = vmatprep.subr.mxu0 %v787_v0 }
  0x43   :  { %673 = vmatprep.subr.mxu1 %v787_v0  ;;  %669 = vmatpush3.msra.mxu0 %v198_v20 }
  0x44   :  { %670 = vmatprep.mubr.msk.f32.mxu0 %vm788_vm0, %v787_v0  ;;  %674 = vmatpush3.msra.mxu1 %v830_v4 }
  0x45   :  { %671 = vmatmul.mubr.f32.vlgmr.msra.gmra.mxu0 %v840_v12  ;;  %675 = vmatprep.subr.mxu1 %v787_v0 }
  0x46   :  { %681 = vmatprep.mubr.msk.f32.mxu1 %vm788_vm0, %v787_v0  ;;  %676 = vmatpush3.msra.mxu1 %v832_v5 }
  0x47   :  { %677 = vmatprep.subr.mxu1 %v787_v0 }
  0x48   :  { %678 = vmatpush3.msra.mxu1 %v834_v6 }
  0x49   :  { %679 = vmatprep.subr.mxu1 %v787_v0 }
  0x4a   :  { %680 = vmatpush3.msra.mxu1 %v836_v9 }
  0x4b   :  { %682 = vmatmul.mubr.f32.vlgmr.msra.gmra.mxu1 %v840_v12 }
  0xf3   :  { %v146_v32 = vpop.f32.mrf.mxu0 }
  0xf4   :  { %v147_v38 = vadd.f32 %v587_v35, %v146_v32 }
  0xf5   :  { %v628_v33 = vpop.f32.mrf.mxu0 }
  0xf7   :  { %v237_v34 = vpop.f32.mrf.mxu1 }
  0xf8   :  { %v238_v40 = vadd.f32 %v237_v34, %v147_v38 }
  0xf9   :  { %v639_v36 = vpop.f32.mrf.mxu1 }
  0xfc   :  { %v317_v37 = vpop.f32.mrf.mxu0 }
  0xfd   :  { %v318_v43 = vadd.f32 %v317_v37, %v238_v40 }
  0xfe   :  { %v650_v39 = vpop.f32.mrf.mxu0 }
 0x102   :  { %v394_v41 = vpop.f32.mrf.mxu1 }
 0x103   :  { %v395_v45 = vadd.f32 %v394_v41, %v318_v43 }
 0x104   :  { %v661_v42 = vpop.f32.mrf.mxu1 }
 0x105   :  { %v477_v44 = vpop.f32.mrf.mxu0 }
 0x106   :  { %v478_v47 = vadd.f32 %v477_v44, %v395_v45 }
 0x107   :  { %v672_v46 = vpop.f32.mrf.mxu0 }
 0x10b   :  { %v552_v48 = vpop.f32.mrf.mxu1 }
 0x10c   :  { %v553_v49 = vadd.f32 %v552_v48, %v478_v47 }
 0x10d   :  { %v683_v50 = vpop.f32.mrf.mxu1 }
 0x10e   :  { %v557_v51 = vsel %vm556_vm2, %v553_v49, -inf }
 0x10f   :  { %558 = vmax.xlane.f32.xlu0 %v557_v51 }
 0x198   :  { %v559_v52 = vpop.xlane.xlu0 %558 }
 0x199   :  { %v560_v53 = vsub.f32 %v553_v49, %v559_v52 }
 0x19b   :  { %v561_v54 = vmul.f32 1.442695, %v560_v53 }
 0x19d   :  { %692 = vpow2.f32 %v561_v54 }
 0x1aa   :  { %v693_v55 = vpop.eup %692 }
 0x1ab   :  { %v563_v56 = vsel %vm556_vm2, %v693_v55, 0.0 }
 0x1ac   :  { %564 = vadd.xlane.f32.xlu0 %v563_v56 }
 0x235   :  { %v565_v57 = vpop.xlane.xlu0 %564 }
 0x236   :  { %694 = vrcp.f32 %v565_v57 }
 0x243   :  { %v695_v58 = vpop.eup %694 }
 0x244   :  { %v567_v60 = vmul.f32 %v695_v58, %v693_v55 }
 0x246   :  { %v569_v61 = vmul.f32 %v568_v59, %v567_v60 }
 0x248   :  { %570 = vst.msk [vmem:[#allocation8] sm:$0xff] %vm556_vm2, %v569_v61 }
 0x249   :  { %767 = shalt.err (!%p764_p5)
}
 0x24a   :  { %580 = dma.vmem_to_hbm [thread:$0]  %s578_s5, 128, %s903_s4, [#allocation4]  }
 0x24b   :  { %780 = dma.done.wait [#allocation4], 128  }
 0x24c   :  { %781 = vsyncadd [#allocation4], 4294967168 }
 0x24d   :  { %584 = vsyncpa [#allocation3], 1 }
 0x24e   :  { %585 = vsyncpa [#allocation6], 1 }
 0x24f   :  { %586 = vsyncpa [#allocation4], 1 }

</bundles_post_ra>
